<compile_context>
chip_gen: v7x
topology: tpu7x:2x2x1
jax: 0.10.0
libtpu: 0.0.40
codegen_flags: <defaults>
</compile_context>

<pallas_src>
import functools

import numpy as np
import jax
import jax.numpy as jnp
from jax import lax
from jax.experimental import pallas as pl
from jax.experimental.pallas import tpu as pltpu


def _round_up(x, m):
    return ((x + m - 1) // m) * m


# ============================================================================
# Kernel A: fused FeatureExtractor
#   f1 = relu(W1 @ x + b1); f2 = relu(W2 @ f1 + b2)
#   outputs: concat([f1, f2]) per point tile, masked global max over points.
# ============================================================================
def _fe_kernel(pts_ref, w1_ref, b1_ref, w2_ref, b2_ref,
               local_ref, gmax_ref, *, n_valid, tn):
    nt = pl.program_id(1)
    x = pts_ref[0]                                                    # (8, TN)
    f1 = jnp.maximum(
        jnp.dot(w1_ref[...], x, preferred_element_type=jnp.float32) + b1_ref[...],
        0.0)                                                          # (C1, TN)
    f2 = jnp.maximum(
        jnp.dot(w2_ref[...], f1, preferred_element_type=jnp.float32) + b2_ref[...],
        0.0)                                                          # (C2, TN)
    local_ref[0] = jnp.concatenate([f1, f2], axis=0)                  # (C1+C2, TN)

    # masked (pad lanes excluded) running global max over points
    lane = lax.broadcasted_iota(jnp.int32, f2.shape, 1) + nt * tn
    f2m = jnp.where(lane < n_valid, f2, -jnp.inf)
    tile_max = jnp.max(f2m, axis=-1, keepdims=True)                   # (C2, 1)

    @pl.when(nt == 0)
    def _():
        gmax_ref[0] = tile_max

    @pl.when(nt > 0)
    def _():
        gmax_ref[0] = jnp.maximum(gmax_ref[0], tile_max)


def feature_extractor(original_pts, params):
    # TODO(synk): FeatureExtractor internals are not in the provided source;
    # a 3->32->64 point-wise MLP + global max-pool is used as a stand-in.
    B, C0, N = original_pts.shape
    TN = min(512, _round_up(N, 128))
    Npad = _round_up(N, TN)

    pts_p = jnp.pad(original_pts, ((0, 0), (0, 8 - C0), (0, Npad - N)))
    w1 = jnp.pad(params["fe_w1"], ((0, 0), (0, 8 - C0)))              # (32, 8)
    b1 = params["fe_b1"].reshape(-1, 1)
    w2 = params["fe_w2"]                                              # (64, 32)
    b2 = params["fe_b2"].reshape(-1, 1)
    C1, C2 = w1.shape[0], w2.shape[0]

    local, gmax = pl.pallas_call(
        functools.partial(_fe_kernel, n_valid=N, tn=TN),
        out_shape=(jax.ShapeDtypeStruct((B, C1 + C2, Npad), jnp.float32),
                   jax.ShapeDtypeStruct((B, C2, 1), jnp.float32)),
        grid_spec=pltpu.PrefetchScalarGridSpec(
            num_scalar_prefetch=0,
            grid=(B, Npad // TN),
            in_specs=[
                pl.BlockSpec((1, 8, TN), lambda b, nt: (b, 0, nt)),
                pl.BlockSpec((C1, 8), lambda b, nt: (0, 0)),
                pl.BlockSpec((C1, 1), lambda b, nt: (0, 0)),
                pl.BlockSpec((C2, C1), lambda b, nt: (0, 0)),
                pl.BlockSpec((C2, 1), lambda b, nt: (0, 0)),
            ],
            out_specs=[
                pl.BlockSpec((1, C1 + C2, TN), lambda b, nt: (b, 0, nt)),
                pl.BlockSpec((1, C2, 1), lambda b, nt: (b, 0, 0)),
            ]),
        compiler_params=pltpu.CompilerParams(
            dimension_semantics=("parallel", "arbitrary")),
    )(pts_p, w1, b1, w2, b2)
    return local, gmax


# ============================================================================
# Kernel B: Gaussian kNN interpolation + concat + adaptive channel max-pool
#           + regression head, fused, gridded over (batch, M tiles).
# ============================================================================
def _tail_kernel(pts_ref, pp_ref, q_ref, feat_ref, g_ref,
                 s1_ref, s2_ref, s3_ref, bsel_ref,
                 w1_ref, b1_ref, w2_ref, b2_ref, o_ref,
                 *, k, inv2s2, nblk, rpb):
    p_t = pts_ref[0]                   # (Np, 8)  original points (transposed)
    pp = pp_ref[0]                     # (Np, 1)  |p|^2, 1e30 on padded rows
    q = q_ref[0]                       # (8,  TM) query tile (ch 0..2 real)
    feat = feat_ref[0]                 # (Cl, Np) local feats
    g = g_ref[0]                       # (Cg, 1)  global feats
    Np = p_t.shape[0]
    TM = q.shape[1]

    # ---- Gaussian kNN interpolation (k = 3) -------------------------------
    # d[n, m] = |p_n|^2 - 2 p_n.q_m ; the per-query |q_m|^2 term is constant
    # per column and cancels after weight normalization.
    qp = jnp.dot(p_t, q, preferred_element_type=jnp.float32)          # (Np, TM)
    d = pp - 2.0 * qp
    rowf = lax.broadcasted_iota(jnp.float32, (Np, TM), 0)
    big = jnp.float32(1e30)
    W = jnp.zeros((Np, TM), jnp.float32)
    wsum = jnp.zeros((1, TM), jnp.float32)
    d0 = jnp.zeros((1, TM), jnp.float32)
    for kk in range(k):                                               # unrolled
        cmin = jnp.min(d, axis=0, keepdims=True)                      # (1, TM)
        # tie-break: lowest index (matches a stable argsort for generic data)
        idx = jnp.min(jnp.where(d == cmin, rowf, float(Np)),
                      axis=0, keepdims=True)
        sel = rowf == idx                                             # one-hot col
        if kk == 0:
            d0 = cmin
            wk = jnp.ones((1, TM), jnp.float32)                       # exp(0)
        else:
            wk = jnp.exp((d0 - cmin) * inv2s2)                        # <= 1 -> wsum >= 1
        W = W + jnp.where(sel, wk, 0.0)
        wsum = wsum + wk
        d = jnp.where(sel, big, d)

    interp = jnp.dot(feat, W, preferred_element_type=jnp.float32)     # (Cl, TM)
    interp = interp * pl.reciprocal(wsum, approx=True)                # normalize post-matmul

    # ---- channel concat + adaptive max-pool over channels ------------------
    gb = jnp.broadcast_to(g, (g.shape[0], TM))                        # (Cg, TM)
    gathered = (jnp.dot(s1_ref[...], q, preferred_element_type=jnp.float32)
                + jnp.dot(s2_ref[...], interp, preferred_element_type=jnp.float32)
                + jnp.dot(s3_ref[...], gb, preferred_element_type=jnp.float32)
                + bsel_ref[...])                                      # (nblk*rpb, TM)
    pooled = gathered[0:rpb, :]
    for t in range(1, nblk):                                          # aligned slices
        pooled = jnp.maximum(pooled, gathered[t * rpb:(t + 1) * rpb, :])

    # ---- regression head ----------------------------------------------------
    h = jnp.maximum(
        jnp.dot(w1_ref[...], pooled, preferred_element_type=jnp.float32)
        + b1_ref[...], 0.0)                                           # (32, TM)
    o_ref[0] = (jnp.dot(w2_ref[...], h, preferred_element_type=jnp.float32)
                + b2_ref[...])                                        # (8, TM)


def interp_pool_regress(original_pts, query_pts, local_feats, global_feats,
                        params, out_size, k=3, sigma=1.0):
    # TODO(synk): CSARegressor internals are not in the provided source;
    # an out_size->32->1 point-wise regression head is used as a stand-in.
    # TODO(synk): for very large N the dense (Cl,Np)@(Np,TM) aggregation could
    # be replaced by a streaming top-3 + gather scheme (mainly relevant on v5e).
    B, C0, N = original_pts.shape
    M = query_pts.shape[-1]
    Cl = local_feats.shape[1]
    Cg = global_feats.shape[1]
    Npad = local_feats.shape[2]

    TM = min(256, _round_up(M, 128))
    Mpad = _round_up(M, TM)

    pts_t = jnp.pad(jnp.swapaxes(original_pts, 1, 2),
                    ((0, 0), (0, Npad - N), (0, 8 - C0)))             # (B, Npad, 8)
    pp = jnp.sum(original_pts.astype(jnp.float32) ** 2, axis=1)       # (B, N)
    pp = jnp.pad(pp, ((0, 0), (0, Npad - N)), constant_values=1e30)[..., None]
    q_p = jnp.pad(query_pts, ((0, 0), (0, 8 - C0), (0, Mpad - M)))    # (B, 8, Mpad)

    # Static selection matrices: adaptive_max_pool1d over the 163 "agg"
    # channels becomes 3 tiny matmuls + (nblk-1) aligned element-wise maxes.
    C_agg = C0 + Cl + Cg
    windows = [((j * C_agg) // out_size, -((-(j + 1) * C_agg) // out_size))
               for j in range(out_size)]
    nblk = max(e - s for s, e in windows)          # max window size
    rpb = _round_up(out_size, 8)                   # rows per offset block
    rws = nblk * rpb
    S1 = np.zeros((rws, 8), np.float32)
    S2 = np.zeros((rws, Cl), np.float32)
    S3 = np.zeros((rws, Cg), np.float32)
    bsel = np.full((rws, 1), -1e30, np.float32)    # finite so 0*(-1e30)=0 later
    for j, (s, e) in enumerate(windows):
        for t in range(e - s):
            ch = s + t
            r = t * rpb + j
            bsel[r, 0] = 0.0
            if ch < C0:
                S1[r, ch] = 1.0
            elif ch < C0 + Cl:
                S2[r, ch - C0] = 1.0
            else:
                S3[r, ch - C0 - Cl] = 1.0
    S1, S2, S3, bsel = map(jnp.asarray, (S1, S2, S3, bsel))

    Ch = params["rg_w1"].shape[0]
    w1r = jnp.pad(params["rg_w1"], ((0, 0), (0, rpb - out_size)))     # (Ch, rpb)
    b1r = params["rg_b1"].reshape(-1, 1)
    w2r = jnp.pad(params["rg_w2"], ((0, 8 - params["rg_w2"].shape[0]), (0, 0)))
    b2r = jnp.pad(params["rg_b2"].reshape(-1, 1),
                  ((0, 8 - params["rg_b2"].shape[0]), (0, 0)))

    out = pl.pallas_call(
        functools.partial(_tail_kernel, k=k, inv2s2=1.0 / (2.0 * sigma * sigma),
                          nblk=nblk, rpb=rpb),
        out_shape=jax.ShapeDtypeStruct((B, 8, Mpad), jnp.float32),
        grid_spec=pltpu.PrefetchScalarGridSpec(
            num_scalar_prefetch=0,
            grid=(B, Mpad // TM),
            in_specs=[
                pl.BlockSpec((1, Npad, 8), lambda b, mt: (b, 0, 0)),   # pts^T
                pl.BlockSpec((1, Npad, 1), lambda b, mt: (b, 0, 0)),   # |p|^2
                pl.BlockSpec((1, 8, TM), lambda b, mt: (b, 0, mt)),    # query tile
                pl.BlockSpec((1, Cl, Npad), lambda b, mt: (b, 0, 0)),  # local feats
                pl.BlockSpec((1, Cg, 1), lambda b, mt: (b, 0, 0)),     # global feats
                pl.BlockSpec((rws, 8), lambda b, mt: (0, 0)),
                pl.BlockSpec((rws, Cl), lambda b, mt: (0, 0)),
                pl.BlockSpec((rws, Cg), lambda b, mt: (0, 0)),
                pl.BlockSpec((rws, 1), lambda b, mt: (0, 0)),
                pl.BlockSpec((Ch, rpb), lambda b, mt: (0, 0)),
                pl.BlockSpec((Ch, 1), lambda b, mt: (0, 0)),
                pl.BlockSpec((8, Ch), lambda b, mt: (0, 0)),
                pl.BlockSpec((8, 1), lambda b, mt: (0, 0)),
            ],
            out_specs=pl.BlockSpec((1, 8, TM), lambda b, mt: (b, 0, mt))),
        compiler_params=pltpu.CompilerParams(
            dimension_semantics=("parallel", "parallel"),
            vmem_limit_bytes=48 * 1024 * 1024),
    )(pts_t, pp, q_p, local_feats, global_feats,
      S1, S2, S3, bsel, w1r, b1r, w2r, b2r)
    return out[:, :1, :M]     # single final slice (channels stayed padded)


# ----------------------------------------------------------------------------
# full LiGAPU forward
# ----------------------------------------------------------------------------
def ligapu_forward(params, original_pts, query_pts):
    B = original_pts.shape[0]
    M = query_pts.shape[-1]
    out_size = int(M / B * 10 - 4)
    local_feats, global_feats = feature_extractor(original_pts, params)
    # kNN indices/weights depend only on coordinates, so interpolating the
    # channel-concat of the local feature levels equals the reference
    # per-feature / per-batch loop.  F.interpolate(size=M, mode='linear',
    # align_corners=False) on a length-M signal is the identity.
    return interp_pool_regress(original_pts, query_pts, local_feats,
                               global_feats, params, out_size)


# ----------------------------------------------------------------------------
# pure-JAX reference (same math, no Pallas) for validation
# ----------------------------------------------------------------------------
def ref_forward(params, original_pts, query_pts):
    def pw(x, w, b, relu):
        y = jnp.einsum("oc,bcn->bon", w, x) + b[None, :, None]
        return jnp.maximum(y, 0.0) if relu else y

    B, _, N = original_pts.shape
    M = query_pts.shape[-1]
    f1 = pw(original_pts, params["fe_w1"], params["fe_b1"], True)
    f2 = pw(f1, params["fe_w2"], params["fe_b2"], True)
    g = jnp.max(f2, axis=-1)
    feats = jnp.concatenate([f1, f2], axis=1)

    d = (jnp.sum(query_pts ** 2, axis=1)[:, :, None]
         + jnp.sum(original_pts ** 2, axis=1)[:, None, :]
         - 2.0 * jnp.einsum("bcm,bcn->bmn", query_pts, original_pts))
    d = jnp.maximum(d, 0.0)
    idx = jnp.argsort(d, axis=-1)[:, :, :3]                          # (B,M,3)
    dk = jnp.take_along_axis(d, idx, axis=-1)
    w = jnp.exp(-dk / 2.0)
    w = w / jnp.sum(w, axis=-1, keepdims=True)
    fk = jax.vmap(lambda f, i: f[:, i])(feats, idx)                  # (B,C,M,3)
    interp = jnp.sum(fk * w[:, None, :, :], axis=-1)                 # (B,C,M)

    agg = jnp.concatenate(
        [query_pts, interp, jnp.repeat(g[:, :, None], M, axis=2)], axis=1)
    C = agg.shape[1]
    out_size = int(M / B * 10 - 4)
    cols = []
    for j in range(out_size):
        s = (j * C) // out_size
        e = -((-(j + 1) * C) // out_size)
        cols.append(jnp.max(agg[:, s:e, :], axis=1, keepdims=True))
    pooled = jnp.concatenate(cols, axis=1)
    h = pw(pooled, params["rg_w1"], params["rg_b1"], True)
    return pw(h, params["rg_w2"], params["rg_b2"], False)


# ----------------------------------------------------------------------------
if __name__ == "__main__":
    key = jax.random.PRNGKey(0)
    kp, kq, k0, k1, k2, k3, k4, k5, k6, k7 = jax.random.split(key, 10)

    B, N, M = 2, 16, 8
    out_size = int(M / B * 10 - 4)   # = 36, channel count after adaptive pool

    original_pts = jax.random.normal(kp, (B, 3, N), jnp.float32)
    query_pts = jax.random.normal(kq, (B, 3, M), jnp.float32)

    params = {
        "fe_w1": 0.1 * jax.random.normal(k0, (32, 3), jnp.float32),
        "fe_b1": 0.01 * jax.random.normal(k1, (32,), jnp.float32),
        "fe_w2": 0.1 * jax.random.normal(k2, (64, 32), jnp.float32),
        "fe_b2": 0.01 * jax.random.normal(k3, (64,), jnp.float32),
        "rg_w1": 0.1 * jax.random.normal(k4, (32, out_size), jnp.float32),
        "rg_b1": 0.01 * jax.random.normal(k5, (32,), jnp.float32),
        "rg_w2": 0.1 * jax.random.normal(k6, (1, 32), jnp.float32),
        "rg_b2": 0.01 * jax.random.normal(k7, (1,), jnp.float32),
    }

    p2p = jax.block_until_ready(ligapu_forward(params, original_pts, query_pts))
    assert p2p.shape == (B, 1, M), p2p.shape

    ref = jax.block_until_ready(ref_forward(params, original_pts, query_pts))
    np.testing.assert_allclose(np.asarray(p2p), np.asarray(ref),
                               rtol=2e-3, atol=2e-3)
    print("KERNEL_OK")
</pallas_src>

<mosaic_0001>
module attributes {stable_mosaic.version = 11 : i64} {
  func.func @_fe_kernel(%arg0: i32, %arg1: i32, %arg2: memref<1x8x128xf32, #tpu.memory_space<vmem>>, %arg3: memref<32x8xf32, #tpu.memory_space<vmem>>, %arg4: memref<32x1xf32, #tpu.memory_space<vmem>>, %arg5: memref<64x32xf32, #tpu.memory_space<vmem>>, %arg6: memref<64x1xf32, #tpu.memory_space<vmem>>, %arg7: memref<1x96x128xf32, #tpu.memory_space<vmem>>, %arg8: memref<1x64x1xf32, #tpu.memory_space<vmem>>) attributes {dimension_semantics = [#tpu.dimension_semantics<parallel>, #tpu.dimension_semantics<arbitrary>], iteration_bounds = array<i64: 2, 1>, scalar_prefetch = 0 : i64, scratch_operands = 0 : i64, tpu.core_type = #tpu.core_type<tc>, window_params = [{transform_indices = @transform_0, window_bounds = array<i64: 1, 8, 128>}, {pipeline_mode = #tpu.pipeline_mode<synchronous>, transform_indices = @transform_1, window_bounds = array<i64: 32, 8>}, {pipeline_mode = #tpu.pipeline_mode<synchronous>, transform_indices = @transform_2, window_bounds = array<i64: 32, 1>}, {pipeline_mode = #tpu.pipeline_mode<synchronous>, transform_indices = @transform_3, window_bounds = array<i64: 64, 32>}, {pipeline_mode = #tpu.pipeline_mode<synchronous>, transform_indices = @transform_4, window_bounds = array<i64: 64, 1>}, {transform_indices = @transform_5, window_bounds = array<i64: 1, 96, 128>}, {transform_indices = @transform_6, window_bounds = array<i64: 1, 64, 1>}]} {
    %c0 = arith.constant 0 : index
    %c0_0 = arith.constant 0 : index
    %c0_1 = arith.constant 0 : index
    %0 = vector.load %arg2[%c0, %c0_0, %c0_1] : memref<1x8x128xf32, #tpu.memory_space<vmem>>, vector<1x8x128xf32>
    %1 = vector.shape_cast %0 : vector<1x8x128xf32> to vector<8x128xf32>
    %c0_2 = arith.constant 0 : index
    %c0_3 = arith.constant 0 : index
    %2 = vector.load %arg3[%c0_2, %c0_3] : memref<32x8xf32, #tpu.memory_space<vmem>>, vector<32x8xf32>
    %cst = arith.constant dense<0.000000e+00> : vector<32x128xf32>
    %3 = tpu.matmul %2, %1, %cst {dimension_numbers = #tpu.dot_dimension_numbers<[1], [0], [0], [1], [0, 0, 1, 1], [], []>} : vector<32x8xf32>, vector<8x128xf32>, vector<32x128xf32> -> vector<32x128xf32>
    %c0_4 = arith.constant 0 : index
    %c0_5 = arith.constant 0 : index
    %4 = vector.load %arg4[%c0_4, %c0_5] : memref<32x1xf32, #tpu.memory_space<vmem>>, vector<32x1xf32>
    %5 = vector.broadcast %4 : vector<32x1xf32> to vector<32x128xf32>
    %6 = arith.addf %3, %5 : vector<32x128xf32>
    %cst_6 = arith.constant 0.000000e+00 : f32
    %7 = vector.broadcast %cst_6 : f32 to vector<32x128xf32>
    %8 = arith.maximumf %6, %7 : vector<32x128xf32>
    %c0_7 = arith.constant 0 : index
    %c0_8 = arith.constant 0 : index
    %9 = vector.load %arg5[%c0_7, %c0_8] : memref<64x32xf32, #tpu.memory_space<vmem>>, vector<64x32xf32>
    %cst_9 = arith.constant dense<0.000000e+00> : vector<64x128xf32>
    %10 = tpu.matmul %9, %8, %cst_9 {dimension_numbers = #tpu.dot_dimension_numbers<[1], [0], [0], [1], [0, 0, 1, 1], [], []>} : vector<64x32xf32>, vector<32x128xf32>, vector<64x128xf32> -> vector<64x128xf32>
    %c0_10 = arith.constant 0 : index
    %c0_11 = arith.constant 0 : index
    %11 = vector.load %arg6[%c0_10, %c0_11] : memref<64x1xf32, #tpu.memory_space<vmem>>, vector<64x1xf32>
    %12 = vector.broadcast %11 : vector<64x1xf32> to vector<64x128xf32>
    %13 = arith.addf %10, %12 : vector<64x128xf32>
    %cst_12 = arith.constant 0.000000e+00 : f32
    %14 = vector.broadcast %cst_12 : f32 to vector<64x128xf32>
    %15 = arith.maximumf %13, %14 : vector<64x128xf32>
    %16 = tpu.concatenate %8, %15 in 0 : vector<32x128xf32>, vector<64x128xf32> -> vector<96x128xf32>
    %c0_13 = arith.constant 0 : index
    %c0_14 = arith.constant 0 : index
    %c0_15 = arith.constant 0 : index
    %17 = vector.load %arg7[%c0_13, %c0_14, %c0_15] : memref<1x96x128xf32, #tpu.memory_space<vmem>>, vector<1x96x128xf32>
    %18 = vector.shape_cast %17 : vector<1x96x128xf32> to vector<96x128xf32>
    %19 = vector.shape_cast %16 : vector<96x128xf32> to vector<1x96x128xf32>
    tpu.vector_store %arg7[%c0_13, %c0_14, %c0_15], %19 {strides = array<i32>} : memref<1x96x128xf32, #tpu.memory_space<vmem>>, vector<1x96x128xf32>,
    %20 = tpu.iota {dimensions = array<i32: 1>} : vector<64x128xi32>
    %c128_i32 = arith.constant 128 : i32
    %21 = arith.muli %arg1, %c128_i32 : i32
    %22 = vector.broadcast %21 : i32 to vector<64x128xi32>
    %23 = arith.addi %20, %22 : vector<64x128xi32>
    %c16_i32 = arith.constant 16 : i32
    %24 = vector.broadcast %c16_i32 : i32 to vector<64x128xi32>
    %25 = arith.cmpi slt, %23, %24 : vector<64x128xi32>
    %cst_16 = arith.constant 0xFF800000 : f32
    %26 = vector.broadcast %cst_16 : f32 to vector<64x128xf32>
    %27 = arith.select %25, %15, %26 : vector<64x128xi1>, vector<64x128xf32>
    %cst_17 = arith.constant dense<0xFF800000> : vector<64xf32>
    %28 = vector.multi_reduction <maximumf>, %27, %cst_17 [1] : vector<64x128xf32> to vector<64xf32>
    %29 = vector.shape_cast %28 : vector<64xf32> to vector<64x1xf32>
    %c0_i32 = arith.constant 0 : i32
    %30 = arith.cmpi eq, %arg1, %c0_i32 : i32
    %31 = arith.extui %30 : i1 to i32
    %c0_i32_18 = arith.constant 0 : i32
    %32 = arith.cmpi ne, %31, %c0_i32_18 : i32
    scf.if %32 {
      %c0_21 = arith.constant 0 : index
      %c0_22 = arith.constant 0 : index
      %c0_23 = arith.constant 0 : index
      %36 = vector.load %arg8[%c0_21, %c0_22, %c0_23] : memref<1x64x1xf32, #tpu.memory_space<vmem>>, vector<1x64x1xf32>
      %37 = vector.shape_cast %36 : vector<1x64x1xf32> to vector<64x1xf32>
      %38 = vector.shape_cast %29 : vector<64x1xf32> to vector<1x64x1xf32>
      tpu.vector_store %arg8[%c0_21, %c0_22, %c0_23], %38 {strides = array<i32>} : memref<1x64x1xf32, #tpu.memory_space<vmem>>, vector<1x64x1xf32>,
    } else {
    }
    %c0_i32_19 = arith.constant 0 : i32
    %33 = arith.cmpi sgt, %arg1, %c0_i32_19 : i32
    %34 = arith.extui %33 : i1 to i32
    %c0_i32_20 = arith.constant 0 : i32
    %35 = arith.cmpi ne, %34, %c0_i32_20 : i32
    scf.if %35 {
      %c0_21 = arith.constant 0 : index
      %c0_22 = arith.constant 0 : index
      %c0_23 = arith.constant 0 : index
      %36 = vector.load %arg8[%c0_21, %c0_22, %c0_23] : memref<1x64x1xf32, #tpu.memory_space<vmem>>, vector<1x64x1xf32>
      %37 = vector.shape_cast %36 : vector<1x64x1xf32> to vector<64x1xf32>
      %38 = arith.maximumf %37, %29 : vector<64x1xf32>
      %c0_24 = arith.constant 0 : index
      %c0_25 = arith.constant 0 : index
      %c0_26 = arith.constant 0 : index
      %39 = vector.load %arg8[%c0_24, %c0_25, %c0_26] : memref<1x64x1xf32, #tpu.memory_space<vmem>>, vector<1x64x1xf32>
      %40 = vector.shape_cast %39 : vector<1x64x1xf32> to vector<64x1xf32>
      %41 = vector.shape_cast %38 : vector<64x1xf32> to vector<1x64x1xf32>
      tpu.vector_store %arg8[%c0_24, %c0_25, %c0_26], %41 {strides = array<i32>} : memref<1x64x1xf32, #tpu.memory_space<vmem>>, vector<1x64x1xf32>,
    } else {
    }
    return
  }
  func.func @transform_0(%arg0: i32, %arg1: i32) -> (i32, i32, i32) {
    %c0_i32 = arith.constant 0 : i32
    %c0_i32_0 = arith.constant 0 : i32
    return %arg0, %c0_i32, %arg1 : i32, i32, i32
  }
  func.func @transform_1(%arg0: i32, %arg1: i32) -> (i32, i32) {
    %c0_i32 = arith.constant 0 : i32
    %c0_i32_0 = arith.constant 0 : i32
    %c0_i32_1 = arith.constant 0 : i32
    return %c0_i32, %c0_i32_0 : i32, i32
  }
  func.func @transform_2(%arg0: i32, %arg1: i32) -> (i32, i32) {
    %c0_i32 = arith.constant 0 : i32
    %c0_i32_0 = arith.constant 0 : i32
    %c0_i32_1 = arith.constant 0 : i32
    return %c0_i32, %c0_i32_0 : i32, i32
  }
  func.func @transform_3(%arg0: i32, %arg1: i32) -> (i32, i32) {
    %c0_i32 = arith.constant 0 : i32
    %c0_i32_0 = arith.constant 0 : i32
    %c0_i32_1 = arith.constant 0 : i32
    return %c0_i32, %c0_i32_0 : i32, i32
  }
  func.func @transform_4(%arg0: i32, %arg1: i32) -> (i32, i32) {
    %c0_i32 = arith.constant 0 : i32
    %c0_i32_0 = arith.constant 0 : i32
    %c0_i32_1 = arith.constant 0 : i32
    return %c0_i32, %c0_i32_0 : i32, i32
  }
  func.func @transform_5(%arg0: i32, %arg1: i32) -> (i32, i32, i32) {
    %c0_i32 = arith.constant 0 : i32
    %c0_i32_0 = arith.constant 0 : i32
    return %arg0, %c0_i32, %arg1 : i32, i32, i32
  }
  func.func @transform_6(%arg0: i32, %arg1: i32) -> (i32, i32, i32) {
    %c0_i32 = arith.constant 0 : i32
    %c0_i32_0 = arith.constant 0 : i32
    %c0_i32_1 = arith.constant 0 : i32
    return %arg0, %c0_i32, %c0_i32_0 : i32, i32, i32
  }
}

</mosaic_0001>

<bundles_post_ra>
// kernel: tpu_custom_call.1
= control target key start
LH: loop header
LB: loop body
LE: loop exit
PB: predicated region body
PF: predicated region fallthrough
CT: control target
= control target key end

     0   :  { %12 = vsyncpa [#allocation3], 0  ;;  %s1320_s0 = inlined_call_operand.vmem [shape: f32[2,8,128], index: 0, kind: input, shape index: {}]   ;;  %s1321_s1 = inlined_call_operand.vmem [shape: f32[32,8], index: 1, kind: input, shape index: {}]   ;;  %s1322_s2 = inlined_call_operand.vmem [shape: f32[32,1], index: 2, kind: input, shape index: {}]   ;;  %s1323_s3 = inlined_call_operand.vmem [shape: f32[64,32], index: 3, kind: input, shape index: {}]   ;;  %s1324_s4 = inlined_call_operand.vmem [shape: f32[64,1], index: 4, kind: input, shape index: {}]   ;;  %s1325_s5 = inlined_call_operand.hbm [shape: f32[2,96,128], index: 5, kind: output, shape index: {0}]   ;;  %s1326_s6 = inlined_call_operand.vmem [shape: f32[2,64,1], index: 6, kind: output, shape index: {1}]  }
   0x1   :  { %14 = vsyncpa [#allocation3 + $0x1], 0  ;;  %s1079_s21 = smov 0   ;;  %s1081_s22 = smov 0  }
   0x2   :  { %s1083_s23 = smov 0   ;;  %s1085_s24 = smov 0  }
   0x3   :  { %s1087_s25 = smov 0   ;;  %s1089_s26 = smov 0  }
   0x4 LB: > { %s817_s27 = sadd.s32 4294967295, %s1038_s26   ;;  %s818_s28 = sadd.s32 4294967294, %s1038_s26   ;;  %s1038_s26 = sphi %s1089_s26, %s20_s26   ;;  %s1034_s25 = sphi %s1087_s25, %s1333_s25   ;;  %s1030_s24 = sphi %s1085_s24, %s1332_s24   ;;  %s1026_s23 = sphi %s1083_s23, %s1331_s23   ;;  %s1022_s22 = sphi %s1081_s22, %s1330_s22   ;;  %s1018_s21 = sphi %s1079_s21, %s1329_s21  }
   0x5   : > { %s32_s29 = sadd.s32 1, %s1034_s25  ;;  %s153_s30 = sadd.s32 1, %s1026_s23 }
   0x6   : > { %p34_p0 = scmp.ge.s32.totalorder %s32_s29, 2  ;;  %p163_p1 = scmp.ne.s32.totalorder %s1026_s23, %s1022_s22 }
   0x7   : > { %p164_p2 = scmp.eq.s32.totalorder %s817_s27, 1  ;;  %p169_p3 = scmp.ne.s32.totalorder %s1022_s22, %s1018_s21 }
   0x8   : > { %s1335_s29 = smov (%p34_p0, %s32_s29), 0  ;;  %p170_p5 = scmp.eq.s32.totalorder %s818_s28, 1 }
   0x9   : > { %p1119_p4 = por %p164_p2, %p163_p1  ;;  %s148_s8 = ssub.s32 %s1034_s25, %s1335_s29 }
   0xa   : > { %p821_p6 = scmp.ge.s32.totalorder %s1038_s26, 1  ;;  %p151_p7 = scmp.eq.s32.totalorder %s148_s8, 0 }
   0xb   : > { %p1126_p8 = por %p170_p5, %p169_p3  ;;  %p236_p9 = scmp.lt.s32.totalorder %s1038_s26, 3 }
   0xc   : > { %s1132_s10 = scalar_select %p151_p7, %s1026_s23, %s153_s30  }
   0xd   : > { %p237_p10 = pnand %p821_p6, %p236_p9 }
   0xe   : > { %p273_p11 = scmp.lt.s32.totalorder (!%p237_p10), %s1030_s24, 1  ;;  %v286_v0 = vld [vmem:[%s1321_s1] sm:$0xff] (!%p237_p10)  ;;  %vm314_vm0 = vcmask (!%p237_p10), 64512   ;;  %v1040_v1 = vmov (!%p237_p10), 0   ;;  %v292_v3 = vld [vmem:[%s1322_s2 + $0x10] sm:$0xff] (!%p237_p10)  ;;  %v291_v4 = vld [vmem:[%s1322_s2 + $0x8] sm:$0xff] (!%p237_p10)  ;;  %v622_v46 = vlaneseq (!%p237_p10) }
   0xf   : > { %240 = sbr.rel (%p237_p10) target bundleno = 632 (0x278), region = 40  ;;  %860 = vmatprep.mubr.msk.f32.mxu0 (!%p237_p10), %vm314_vm0, %v286_v0  ;;  %958 = vset.pattern.permute.xlu0 (!%p237_p10), %v1040_v1  ;;  %v290_v2 = vld [vmem:[%s1322_s2] sm:$0xff] (!%p237_p10)  ;;  %v293_v5 = vld [vmem:[%s1322_s2 + $0x18] sm:$0xff] (!%p237_p10)  ;;  %v287_v7 = vld [vmem:[%s1321_s1 + $0x8] sm:$0xff] (!%p237_p10)  ;;  %vm472_vm1 = vcmask (!%p237_p10), 261120   ;;  %s263_s12 = sand.u32 (!%p237_p10), 1, %s1022_s22  }
  0x10   : > { %296 = vperm.xlu0 (!%p237_p10), %958, %v290_v2   ;;  %959 = vset.pattern.permute.xlu1 (!%p237_p10), %v1040_v1  ;;  %v288_v8 = vld [vmem:[%s1321_s1 + $0x10] sm:$0xff] (!%p237_p10)  ;;  %v424_v9 = vld [vmem:[%s1324_s4] sm:$0xff] (!%p237_p10)  ;;  %v425_v10 = vld [vmem:[%s1324_s4 + $0x8] sm:$0xff] (!%p237_p10)  ;;  %s898_s13 = smul.u32 (!%p237_p10), 96, %s263_s12  ;;  %v623_v49 = vand.u32 (!%p237_p10), 127, %v622_v46  ;;  %s1262_s28 = scalar_lea.sflag (!%p237_p10), [#allocation3], %s263_s12 }
  0x11   : > { %306 = vperm.xlu1 (!%p237_p10), %959, %v292_v3   ;;  %v289_v11 = vld [vmem:[%s1321_s1 + $0x18] sm:$0xff] (!%p237_p10)  ;;  %v426_v12 = vld [vmem:[%s1324_s4 + $0x10] sm:$0xff] (!%p237_p10)  ;;  %v428_v14 = vld [vmem:[%s1324_s4 + $0x20] sm:$0xff] (!%p237_p10)  ;;  %s899_s16 = smul.u32 (!%p237_p10), 1536, %s1030_s24 }
  0x12   : > { %v427_v13 = vld [vmem:[%s1324_s4 + $0x18] sm:$0xff] (!%p237_p10)  ;;  %v429_v15 = vld [vmem:[%s1324_s4 + $0x28] sm:$0xff] (!%p237_p10)  ;;  %v430_v16 = vld [vmem:[%s1324_s4 + $0x30] sm:$0xff] (!%p237_p10)  ;;  %s1205_s14 = scalar_lea.vmem (!%p237_p10), [#allocation2], %s898_s13  ;;  %vm627_vm2 = vcmp.lt.s32.totalorder (!%p237_p10), %v623_v49, 16 }
  0x13   : > { %v431_v17 = vld [vmem:[%s1324_s4 + $0x38] sm:$0xff] (!%p237_p10)  ;;  %v416_v18 = vld [vmem:[%s1323_s3] sm:$0xff] (!%p237_p10)  ;;  %v418_v19 = vld [vmem:[%s1323_s3 + $0x10] sm:$0xff] (!%p237_p10)  ;;  %s714_s18 = sshll.u32 (!%p237_p10), %s1205_s14, 4  ;;  %s1258_s18 = int_to_ptr.vmem [resolvable:$true] %s714_s18 }
  0x14   : > { %301 = vperm.xlu0 (!%p237_p10), %958, %v291_v4   ;;  %877 = vmatprep.mubr.msk.f32.mxu1 (!%p237_p10), %vm472_vm1, %v418_v19  ;;  %v417_v38 = vld [vmem:[%s1323_s3 + $0x8] sm:$0xff] (!%p237_p10)  ;;  %v419_v39 = vld [vmem:[%s1323_s3 + $0x18] sm:$0xff] (!%p237_p10)  ;;  %v420_v40 = vld [vmem:[%s1323_s3 + $0x20] sm:$0xff] (!%p237_p10)  ;;  %s960_s30 = scalar_lea.vmem (!%p237_p10), %s1258_s18, 1536 }
  0x15   : > { %311 = vperm.xlu1 (!%p237_p10), %959, %v293_v5   ;;  %v421_v41 = vld [vmem:[%s1323_s3 + $0x28] sm:$0xff] (!%p237_p10)  ;;  %v422_v42 = vld [vmem:[%s1323_s3 + $0x30] sm:$0xff] (!%p237_p10)  ;;  %v423_v43 = vld [vmem:[%s1323_s3 + $0x38] sm:$0xff] (!%p237_p10)  ;;  %p961_p12 = scmp.ne.s32.totalorder (!%p237_p10), %s1258_s18, %s960_s30 }
  0x16   : > { %s1146_s17 = scalar_select %p273_p11, %s1030_s24, 1 }
  0x17   : > { %p962_p13 = pnand %p961_p12, %p1119_p4  ;;  %s1041_s24 = smov [#allocation2]  }
  0x18   : > { %s822_s20 = sshll.u32 %s1146_s17, 3  ;;  %434 = vperm.xlu0 %958, %v424_v9  }
  0x19   : > { %s279_s11 = scalar_lea.vmem %s1320_s0, %s822_s20  ;;  %439 = vperm.xlu1 %959, %v425_v10   ;;  %s1256_s20 = scalar_lea.hbm %s1325_s5, %s899_s16 }
  0x1a   : > { %v285_v6 = vld [vmem:[%s279_s11] sm:$0xff]  ;;  %p963_p0 = pneg %p962_p13 }
  0x1b   : > { %858 = vmatprep.subr.mxu0 %v285_v6 }
  0x1c   : > { %859 = vmatpush3.msra.mxu0 %v285_v6  ;;  %444 = vperm.xlu0 %958, %v426_v12  }
  0x1d   : > { %861 = vmatmul.mubr.msk.f32.vlgmr.msra.gmra.mrb[0].mxu0 %vm314_vm0, %v287_v7  ;;  %449 = vperm.xlu1 %959, %v427_v13  }
  0x1e   : > { %863 = vmatprep.mubr.msk.f32.mxu0 %vm314_vm0, %v288_v8 }
  0x20   : > { %454 = vperm.xlu0 %958, %v428_v14  }
  0x21   : > { %864 = vmatmul.mubr.msk.f32.gmra.mrb[2].mxu0 %vm314_vm0, %v289_v11  ;;  %459 = vperm.xlu1 %959, %v429_v15  }
  0x22   : > { %874 = vmatprep.mubr.msk.f32.mxu0 %vm472_vm1, %v416_v18 }
  0x24   : > { %464 = vperm.xlu0 %958, %v430_v16  }
  0x25   : > { %469 = vperm.xlu1 %959, %v431_v17  }
  0x8f   : > { %v297_v20 = vpop.permute.xlu0 %296 }
  0x90   : > { %v307_v21 = vpop.permute.xlu1 %306 }
  0x93   : > { %v302_v22 = vpop.permute.xlu0 %301 }
  0x94   : > { %v312_v28 = vpop.permute.xlu1 %311 }
  0x97   : > { %v435_v45 = vpop.permute.xlu0 %434 }
  0x98   : > { %v440_v44 = vpop.permute.xlu1 %439 }
  0x9b   : > { %v445_v48 = vpop.permute.xlu0 %444 }
  0x9c   : > { %v450_v47 = vpop.permute.xlu1 %449 }
  0x9f   : > { %v455_v59 = vpop.permute.xlu0 %454 }
  0xa0   : > { %v460_v56 = vpop.permute.xlu1 %459 }
  0xa3   : > { %v465_v10 = vpop.permute.xlu0 %464 }
  0xa4   : > { %v470_v7 = vpop.permute.xlu1 %469 }
  0xf0   : > { %v862_v23 = vpop.f32.mrb[0].mxu0 }
  0xf1   : > { %v399_v24 = vadd.f32 %v862_v23, %v302_v22  ;;  %v393_v25 = vpop.f32.mrb[1].mxu0 }
  0xf2   : > { %v394_v26 = vadd.f32 %v393_v25, %v297_v20 }
  0xf3   : > { %v413_v27 = vmax.f32 %v399_v24, 0.0 }
  0xf4   : > { %v412_v29 = vmax.f32 %v394_v26, 0.0  ;;  %v865_v30 = vpop.f32.mrb[2].mxu0 }
  0xf5   : > { %611 = vst [vmem:[%s1205_s14 + $0x8] sm:$0xff] %v413_v27  ;;  %v409_v31 = vadd.f32 %v865_v30, %v312_v28  ;;  %v403_v32 = vpop.f32.mrb[3].mxu0 }
  0xf6   : > { %v886_v33 = vpack.c.bf16 %v413_v27, %v412_v29  ;;  %610 = vst [vmem:[%s1205_s14] sm:$0xff] %v412_v29  ;;  %v404_v34 = vadd.f32 %v403_v32, %v307_v21 }
  0xf7   : > { %v415_v35 = vmax.f32 %v409_v31, 0.0 }
  0xf8   : > { %v414_v36 = vmax.f32 %v404_v34, 0.0  ;;  %887 = vmatprep.subr.bf16.mxu0 %v886_v33  ;;  %894 = vmatprep.subr.bf16.mxu1 %v886_v33 }
  0xf9   : > { %613 = vst [vmem:[%s1205_s14 + $0x18] sm:$0xff] %v415_v35  ;;  %889 = vmatpush3.bf16.msra.mxu0 %v886_v33  ;;  %896 = vmatpush3.bf16.msra.mxu1 %v886_v33 }
  0xfa   : > { %v890_v37 = vpack.c.bf16 %v415_v35, %v414_v36  ;;  %612 = vst [vmem:[%s1205_s14 + $0x10] sm:$0xff] %v414_v36 }
  0xfc   : > { %891 = vmatprep.subr.bf16.mxu0 %v890_v37  ;;  %895 = vmatprep.subr.bf16.mxu1 %v890_v37 }
  0xfd   : > { %893 = vmatpush3.bf16.msra.mxu0 %v890_v37  ;;  %897 = vmatpush3.bf16.msra.mxu1 %v890_v37 }
 0x100   : > { %875 = vmatmul.mubr.msk.f32.vlgmr.msra.gmra.mrb[4].mxu0 %vm472_vm1, %v417_v38  ;;  %878 = vmatmul.mubr.msk.f32.vlgmr.msra.gmra.mrb[0].mxu1 %vm472_vm1, %v419_v39 }
 0x101   : > { %880 = vmatprep.mubr.msk.f32.mxu1 %vm472_vm1, %v420_v40 }
 0x104   : > { %881 = vmatmul.mubr.msk.f32.gmra.mrb[2].mxu1 %vm472_vm1, %v421_v41 }
 0x105   : > { %883 = vmatprep.mubr.msk.f32.mxu1 %vm472_vm1, %v422_v42 }
 0x108   : > { %884 = vmatmul.mubr.msk.f32.gmra.mrb[4].mxu1 %vm472_vm1, %v423_v43 }
 0x1d3   : > { %v876_v50 = vpop.f32.mrb[4].mxu0  ;;  %v879_v51 = vpop.f32.mrb[0].mxu1 }
 0x1d4   : > { %v569_v52 = vadd.f32 %v876_v50, %v440_v44  ;;  %v579_v53 = vadd.f32 %v879_v51, %v450_v47  ;;  %v563_v54 = vpop.f32.mrb[5].mxu0  ;;  %v573_v55 = vpop.f32.mrb[1].mxu1 }
 0x1d5   : > { %v564_v57 = vadd.f32 %v563_v54, %v435_v45  ;;  %v574_v58 = vadd.f32 %v573_v55, %v445_v48 }
 0x1d6   : > { %v603_v60 = vmax.f32 %v569_v52, 0.0  ;;  %v605_v61 = vmax.f32 %v579_v53, 0.0 }
 0x1d7   : > { %v602_v62 = vmax.f32 %v564_v57, 0.0  ;;  %v604_v63 = vmax.f32 %v574_v58, 0.0  ;;  %v882_v0 = vpop.f32.mrb[2].mxu1 }
 0x1d8   : > { %615 = vst [vmem:[%s1205_s14 + $0x28] sm:$0xff] %v603_v60  ;;  %617 = vst [vmem:[%s1205_s14 + $0x38] sm:$0xff] %v605_v61  ;;  %v589_v1 = vadd.f32 %v882_v0, %v460_v56  ;;  %v583_v2 = vpop.f32.mrb[3].mxu1  ;;  %v631_v3 = vsel %vm627_vm2, %v605_v61, -inf  ;;  %v629_v4 = vsel %vm627_vm2, %v603_v60, -inf }
 0x1d9   : > { %614 = vst [vmem:[%s1205_s14 + $0x20] sm:$0xff] %v602_v62  ;;  %616 = vst [vmem:[%s1205_s14 + $0x30] sm:$0xff] %v604_v63  ;;  %v584_v5 = vadd.f32 %v583_v2, %v455_v59  ;;  %642 = vmax.xlane.f32.xlu0 %v631_v3  ;;  %638 = vmax.xlane.f32.xlu1 %v629_v4  ;;  %v628_v13 = vsel %vm627_vm2, %v602_v62, -inf  ;;  %v630_v18 = vsel %vm627_vm2, %v604_v63, -inf }
 0x1da   : > { %v607_v6 = vmax.f32 %v589_v1, 0.0 }
 0x1db   : > { %v606_v8 = vmax.f32 %v584_v5, 0.0  ;;  %v885_v9 = vpop.f32.mrb[4].mxu1 }
 0x1dc   : > { %619 = vst [vmem:[%s1205_s14 + $0x48] sm:$0xff] %v607_v6  ;;  %v599_v11 = vadd.f32 %v885_v9, %v470_v7  ;;  %v593_v12 = vpop.f32.mrb[5].mxu1  ;;  %v633_v20 = vsel %vm627_vm2, %v607_v6, -inf }
 0x1dd   : > { %618 = vst [vmem:[%s1205_s14 + $0x40] sm:$0xff] %v606_v8  ;;  %v594_v14 = vadd.f32 %v593_v12, %v465_v10  ;;  %636 = vmax.xlane.f32.xlu0 %v628_v13  ;;  %v632_v15 = vsel %vm627_vm2, %v606_v8, -inf }
 0x1de   : > { %v609_v16 = vmax.f32 %v599_v11, 0.0  ;;  %644 = vmax.xlane.f32.xlu1 %v632_v15 }
 0x1df   : > { %v608_v17 = vmax.f32 %v594_v14, 0.0 }
 0x1e0   : > { %621 = vst [vmem:[%s1205_s14 + $0x58] sm:$0xff] %v609_v16  ;;  %v635_v21 = vsel %vm627_vm2, %v609_v16, -inf }
 0x1e1   : > { %620 = vst [vmem:[%s1205_s14 + $0x50] sm:$0xff] %v608_v17  ;;  %640 = vmax.xlane.f32.xlu0 %v630_v18  ;;  %v634_v19 = vsel %vm627_vm2, %v608_v17, -inf  ;;  %s964_s14 = sshll.u32 %s1041_s24, 4  ;;  %s965_s14 = int_to_ptr.vmem [resolvable:$false] %s964_s14 }
 0x1e2   : > { %648 = vmax.xlane.f32.xlu1 %v634_v19  ;;  %s966_s8 = scalar_lea.vmem %s965_s14, 3072  ;;  %p967_p1 = scmp.lt.s32.totalorder %s1258_s18, %s965_s14 }
 0x1e3   : > { %p968_p2 = scmp.lt.s32.totalorder %s966_s8, %s960_s30 }
 0x1e5   : > { %646 = vmax.xlane.f32.xlu0 %v633_v20  ;;  %p969_p3 = por %p968_p2, %p967_p1 }
 0x1e7   : > { %p970_p5 = pnand %p969_p3, %p963_p0 }
 0x1e9   : > { %650 = vmax.xlane.f32.xlu0 %v635_v21 }
 0x1ea   : > { %973 = shalt.err (!%p970_p5)
}
 0x1eb   : > { %s974_s12 = scalar_lea.hbm %s1256_s20, 1536  ;;  %s978_s15 = scalar_lea.hbm %s1325_s5, 3072 }
 0x1ec   : > { %p975_p6 = scmp.ne.s32.totalorder %s1256_s20, %s974_s12  ;;  %p979_p10 = scmp.lt.u32.totalorder %s1256_s20, %s1325_s5 }
 0x1ed   : > { %p980_p11 = scmp.lt.u32.totalorder %s978_s15, %s974_s12  ;;  %p982_p13 = scmp.lt.u32.totalorder %s974_s12, %s1256_s20 }
 0x1ee   : > { %p976_p7 = pnand %p975_p6, %p1119_p4 }
 0x1ef   : > { %p981_p12 = por %p980_p11, %p979_p10 }
 0x1f0   : > { %p977_p9 = pneg %p976_p7 }
 0x1f1   : > { %p983_p0 = por %p982_p13, %p981_p12 }
 0x1f3   : > { %p984_p1 = pnand %p983_p0, %p977_p9 }
 0x1f5   : > { %987 = shalt.err (!%p984_p1)
}
 0x1f6   : > { %s1042_s27 = smov 128   ;;  %s1043_s30 = smov 8   ;;  %vm656_vm3 = vcmask 7168  }
 0x1f7   : > { %900 = dma.vmem_to_hbm [thread:$0]  (%p1119_p4), %s1258_s18, 1536, %s1256_s20, %s1262_s28, %s1042_s27, %s1042_s27, %s1043_s30  }
 0x1f8   : > { %s840_s24 = sshll.u32 %s1146_s17, 6 }
 0x1f9   : > { %s284_s11 = scalar_lea.vmem %s1326_s6, %s840_s24 }
 0x266   : > { %v643_v22 = vpop.xlane.xlu0 %642  ;;  %v639_v23 = vpop.xlane.xlu1 %638 }
 0x267   : > { %660 = vst.msk [vmem:[%s284_s11 + $0x18] sm:$0xff] %vm656_vm3, %v643_v22  ;;  %658 = vst.msk [vmem:[%s284_s11 + $0x8] sm:$0xff] %vm656_vm3, %v639_v23 }
 0x26a   : > { %v637_v24 = vpop.xlane.xlu0 %636 }
 0x26b   : > { %657 = vst.msk [vmem:[%s284_s11] sm:$0xff] %vm656_vm3, %v637_v24  ;;  %v645_v25 = vpop.xlane.xlu1 %644 }
 0x26c   : > { %661 = vst.msk [vmem:[%s284_s11 + $0x20] sm:$0xff] %vm656_vm3, %v645_v25 }
 0x26e   : > { %v641_v26 = vpop.xlane.xlu0 %640 }
 0x26f   : > { %659 = vst.msk [vmem:[%s284_s11 + $0x10] sm:$0xff] %vm656_vm3, %v641_v26  ;;  %v649_v27 = vpop.xlane.xlu1 %648 }
 0x270   : > { %663 = vst.msk [vmem:[%s284_s11 + $0x30] sm:$0xff] %vm656_vm3, %v649_v27 }
 0x272   : > { %v647_v28 = vpop.xlane.xlu0 %646 }
 0x273   : > { %662 = vst.msk [vmem:[%s284_s11 + $0x28] sm:$0xff] %vm656_vm3, %v647_v28 }
 0x276   : > { %v651_v29 = vpop.xlane.xlu0 %650 }
 0x277   : > { %664 = vst.msk [vmem:[%s284_s11 + $0x38] sm:$0xff] %vm656_vm3, %v651_v29 }
 0x278 PF: > { %p906_p4 = scmp.ge.s32.totalorder %s1038_s26, 2  ;;  %s732_s7 = sand.u32 1, %s1018_s21  }
 0x279   : > { %s733_s17 = scalar_lea.sflag [#allocation3], %s732_s7 }
 0x27a   : > { %p903_p2 = pnand %p906_p4, %p1126_p8 }
 0x27c   : > { %1013 = dma.done.wait (!%p903_p2), %s733_s17, 1536  }
 0x27d   : > { %1015 = vsyncadd (!%p903_p2), %s733_s17, 4294965760  ;;  %s20_s26 = sadd.s32 1, %s1038_s26   ;;  %s1329_s21 = smov %s1022_s22 }
 0x27e   : > { %p17_p3 = scmp.ge.s32.totalorder %s20_s26, 4   ;;  %s1330_s22 = smov %s1026_s23 }
 0x27f   : > { %s1331_s23 = smov %s1132_s10  ;;  %s1332_s24 = smov %s1034_s25 }
 0x280   : > { %s1333_s25 = smov %s1335_s29  ;;  %19 = sbr.rel (!%p17_p3) target bundleno = 4 (0x4), region = 95 }
 0x287   :  { %746 = vsyncpa [#allocation3], 1 }
 0x288   :  { %748 = vsyncpa [#allocation3 + $0x1], 1 }

</bundles_post_ra>
